<compile_context>
chip_gen: v5e
topology: v5e:2x2
jax: 0.10.0
libtpu: 0.0.40
codegen_flags: <defaults>
</compile_context>

<pallas_src>
import functools

import jax
import jax.numpy as jnp
from jax.experimental import pallas as pl
from jax.experimental.pallas import tpu as pltpu

_LANES = 128


def _sublane_multiple(dtype):
    # f32 -> 8, bf16/f16 -> 16, int8/uint8 -> 32
    return max(8, 256 // (jnp.dtype(dtype).itemsize * 8))


def _dice_sums_kernel(score_ref, target_ref, out_ref,
                      acc_i_ref, acc_z_ref, acc_y_ref, *,
                      n_classes, group, fuse_softmax, mask_pad):
    """score_ref: (C, S, 128) native dtype; target_ref: (S, 128) int;
    out_ref: (C, 3) f32 -> [:,0]=intersect, [:,1]=z_sum, [:,2]=y_sum;
    acc_*_ref: (C, group, 128) f32 — cross-lane reduce deferred to finalize."""
    j = pl.program_id(2)

    @pl.when(j == 0)
    def _init():
        acc_i_ref[...] = jnp.zeros_like(acc_i_ref)
        acc_z_ref[...] = jnp.zeros_like(acc_z_ref)
        acc_y_ref[...] = jnp.zeros_like(acc_y_ref)

    tgt = target_ref[...]                                  # (S, 128) int
    s_rows = target_ref.shape[0]
    ng = s_rows // group

    if fuse_softmax:
        # Streaming 2-pass softmax over the class axis (O(1) live vregs):
        # pass 1 running max, pass 2 running sum of exp, p computed JIT below.
        m = score_ref[0].astype(jnp.float32)
        for c in range(1, n_classes):
            m = jnp.maximum(m, score_ref[c].astype(jnp.float32))
        denom = jnp.exp(score_ref[0].astype(jnp.float32) - m)
        for c in range(1, n_classes):
            denom = denom + jnp.exp(score_ref[c].astype(jnp.float32) - m)
        inv = pl.reciprocal(denom, approx=True)            # EUP slot, ~free

    if mask_pad:
        # Padded pixels carry the sentinel label n_classes; only the fused
        # softmax path needs this (otherwise padded scores are exactly 0).
        valid = tgt != n_classes

    for c in range(n_classes):
        if fuse_softmax:
            p = jnp.exp(score_ref[c].astype(jnp.float32) - m) * inv
            if mask_pad:
                p = jnp.where(valid, p, 0.0)
        else:
            p = score_ref[c].astype(jnp.float32)           # padding is 0
        eq = tgt == c
        onehot = eq.astype(jnp.float32)
        # Sublane-group partial reductions are pure elementwise vreg adds
        # (VALU); the expensive cross-sublane/lane reduce happens once in
        # _finalize.  Full (group,128)-vreg RMWs on the accumulators.
        part_i = jnp.where(eq, p, 0.0).reshape(ng, group, _LANES).sum(axis=0)
        part_z = (p * p).reshape(ng, group, _LANES).sum(axis=0)
        part_y = onehot.reshape(ng, group, _LANES).sum(axis=0)
        acc_i_ref[c] += part_i
        acc_z_ref[c] += part_z
        acc_y_ref[c] += part_y

    @pl.when(j == pl.num_programs(2) - 1)
    def _finalize():
        out_ref[:, 0:1] = jnp.sum(jnp.sum(acc_i_ref[...], axis=2),
                                  axis=1, keepdims=True)
        out_ref[:, 1:2] = jnp.sum(jnp.sum(acc_z_ref[...], axis=2),
                                  axis=1, keepdims=True)
        out_ref[:, 2:3] = jnp.sum(jnp.sum(acc_y_ref[...], axis=2),
                                  axis=1, keepdims=True)


def dice_loss(inputs, target, n_classes, weight=None, softmax=False,
              tile_rows=1024):
    """inputs: (B, C, H, W) float (f32/bf16/f16); target: (B, H, W) int labels."""
    B, C, H, W = inputs.shape
    assert C == n_classes, f"Input classes {C} must equal n_classes {n_classes}"
    HW = H * W

    # Keep score in its native dtype — no full-array upcast pass in HBM.
    if jnp.issubdtype(inputs.dtype, jnp.floating) and jnp.dtype(inputs.dtype).itemsize <= 4:
        score = inputs.reshape(B, C, HW)
    else:
        score = inputs.reshape(B, C, HW).astype(jnp.float32)

    # Labels: keep narrow only if they already arrive narrow (a wrapper-side
    # int32->int8 cast would cost its own HBM read+write pass).
    if (jnp.issubdtype(target.dtype, jnp.integer)
            and jnp.dtype(target.dtype).itemsize == 1 and n_classes < 127):
        tgt = target.reshape(B, HW)
    else:
        tgt = target.reshape(B, HW).astype(jnp.int32)

    sentinel = n_classes                     # never matches any real class

    lane_pad = (-HW) % _LANES
    if lane_pad:
        score = jnp.pad(score, ((0, 0), (0, 0), (0, lane_pad)))
        tgt = jnp.pad(tgt, ((0, 0), (0, lane_pad)), constant_values=sentinel)
    rows = (HW + lane_pad) // _LANES
    score = score.reshape(B, C, rows, _LANES)
    tgt = tgt.reshape(B, rows, _LANES)

    # Dtype-correct sublane multiples (f32:8, bf16/f16:16, int8:32).
    sub = max(_sublane_multiple(score.dtype), _sublane_multiple(tgt.dtype))

    # Row-tile size from a fixed double-buffered VMEM budget that fits every
    # generation (v5e/v6e 128 MiB physical, v7x 64 MiB) with the explicit
    # 32 MiB scoped limit below.
    budget = 16 * 1024 * 1024
    per_row = (2 * C * _LANES * score.dtype.itemsize
               + 2 * _LANES * tgt.dtype.itemsize)
    row_cap = max(sub, (budget // per_row) // sub * sub)
    cap = max(sub, min(tile_rows, row_cap))

    if rows <= cap:
        S = rows
    else:
        S = max(sub, (cap // sub) * sub)
    n_tiles = pl.cdiv(rows, S)

    # v7x has 2 TensorCores: when B == 1 split the row axis into two
    # "parallel" chunks so both cores get work (harmless on v5e/v6e).
    if B == 1 and n_tiles == 1 and rows >= 2 * sub:
        S = pl.cdiv(pl.cdiv(rows, 2), sub) * sub
        n_tiles = pl.cdiv(rows, S)
    n_chunks = 2 if (B == 1 and n_tiles >= 2) else 1
    inner = pl.cdiv(n_tiles, n_chunks)
    total_tiles = n_chunks * inner
    padded_rows = total_tiles * S
    row_pad = padded_rows - rows
    if row_pad:
        # Make every block full so the kernel needs no tail masking.
        score = jnp.pad(score, ((0, 0), (0, 0), (0, row_pad), (0, 0)))
        tgt = jnp.pad(tgt, ((0, 0), (0, row_pad), (0, 0)),
                      constant_values=sentinel)

    # Only the fused-softmax path needs any masking of padded pixels
    # (softmax of all-zero scores is 1/C per class, not 0).
    mask_pad = softmax and bool(lane_pad or row_pad)
    group = 8 if S % 8 == 0 else 1

    kernel = functools.partial(
        _dice_sums_kernel, n_classes=C, group=group,
        fuse_softmax=softmax, mask_pad=mask_pad)

    partial_sums = pl.pallas_call(
        kernel,
        out_shape=jax.ShapeDtypeStruct((n_chunks, B, C, 3), jnp.float32),
        grid_spec=pltpu.PrefetchScalarGridSpec(
            num_scalar_prefetch=0,
            grid=(n_chunks, B, inner),
            in_specs=[
                pl.BlockSpec((None, C, S, _LANES),
                             lambda ch, b, j: (b, 0, ch * inner + j, 0)),
                pl.BlockSpec((None, S, _LANES),
                             lambda ch, b, j: (b, ch * inner + j, 0)),
            ],
            out_specs=pl.BlockSpec((None, None, C, 3),
                                   lambda ch, b, j: (ch, b, 0, 0)),
            scratch_shapes=[pltpu.VMEM((C, group, _LANES), jnp.float32)] * 3,
        ),
        compiler_params=pltpu.CompilerParams(
            dimension_semantics=("parallel", "parallel", "arbitrary"),
            vmem_limit_bytes=32 * 1024 * 1024),
    )(score, tgt)

    sums = jnp.sum(partial_sums, axis=(0, 1))              # (C, 3)
    intersect, z_sum, y_sum = sums[:, 0], sums[:, 1], sums[:, 2]
    smooth = 1e-5
    dice = 1.0 - (2.0 * intersect + smooth) / (z_sum + y_sum + smooth)

    if weight is None:
        weight = jnp.ones((n_classes,), jnp.float32)
    else:
        weight = jnp.asarray(weight, jnp.float32)
    return jnp.sum(dice * weight) / n_classes


def _dice_loss_ref(inputs, target, n_classes, weight=None, softmax=False):
    """Pure-JAX reference mirroring the PyTorch module."""
    inputs = inputs.astype(jnp.float32)
    if softmax:
        inputs = jax.nn.softmax(inputs, axis=1)
    onehot = (target[:, None, :, :]
              == jnp.arange(n_classes)[None, :, None, None]).astype(jnp.float32)
    if weight is None:
        weight = [1.0] * n_classes
    smooth = 1e-5
    loss = 0.0
    for i in range(n_classes):
        s = inputs[:, i]
        t = onehot[:, i]
        inter = jnp.sum(s * t)
        y = jnp.sum(t * t)
        z = jnp.sum(s * s)
        d = 1.0 - (2.0 * inter + smooth) / (z + y + smooth)
        loss = loss + d * weight[i]
    return loss / n_classes


if __name__ == "__main__":
    def check(name, out, ref, rtol, atol=1e-6):
        assert jnp.allclose(out, ref, rtol=rtol, atol=atol), (name, out, ref)

    # 1) Base case: f32 score, int32 labels, no softmax.
    B, C, H, W = 2, 4, 16, 16
    k1, k2 = jax.random.split(jax.random.PRNGKey(0))
    x = jax.random.normal(k1, (B, C, H, W), dtype=jnp.float32)
    t = jax.random.randint(k2, (B, H, W), 0, C, dtype=jnp.int32)
    out = jax.block_until_ready(dice_loss(x, t, n_classes=C, softmax=False))
    check("base", out, _dice_loss_ref(x, t, C, softmax=False), rtol=1e-5)

    # 2) Fused streaming softmax (approx reciprocal on EUP -> looser tol).
    out = jax.block_until_ready(dice_loss(x, t, n_classes=C, softmax=True))
    check("softmax", out, _dice_loss_ref(x, t, C, softmax=True),
          rtol=1e-2, atol=1e-3)

    # 3) B == 1: multi-tile reduction + 2-way parallel row chunks (v7x TCs).
    B, C, H, W = 1, 3, 64, 64
    k1, k2 = jax.random.split(jax.random.PRNGKey(1))
    x = jax.random.normal(k1, (B, C, H, W), dtype=jnp.float32)
    t = jax.random.randint(k2, (B, H, W), 0, C, dtype=jnp.int32)
    out = jax.block_until_ready(
        dice_loss(x, t, n_classes=C, softmax=False, tile_rows=8))
    check("chunked", out, _dice_loss_ref(x, t, C, softmax=False), rtol=1e-4)
    out = jax.block_until_ready(dice_loss(x, t, n_classes=C, softmax=False))
    check("autosplit", out, _dice_loss_ref(x, t, C, softmax=False), rtol=1e-4)

    # 4) Lane-tail padding + fused softmax (sentinel-masked z_sum path).
    B, C, H, W = 2, 5, 10, 10
    k1, k2 = jax.random.split(jax.random.PRNGKey(2))
    x = jax.random.normal(k1, (B, C, H, W), dtype=jnp.float32)
    t = jax.random.randint(k2, (B, H, W), 0, C, dtype=jnp.int32)
    out = jax.block_until_ready(dice_loss(x, t, n_classes=C, softmax=True))
    check("lane_pad_softmax", out, _dice_loss_ref(x, t, C, softmax=True),
          rtol=1e-2, atol=1e-3)

    # 5) bf16 score + int8 labels + per-class weights.
    B, C, H, W = 2, 4, 64, 64
    k1, k2 = jax.random.split(jax.random.PRNGKey(3))
    x = jax.random.normal(k1, (B, C, H, W), dtype=jnp.float32).astype(jnp.bfloat16)
    t = jax.random.randint(k2, (B, H, W), 0, C, dtype=jnp.int32).astype(jnp.int8)
    w = [0.5, 1.0, 2.0, 1.5]
    out = jax.block_until_ready(
        dice_loss(x, t, n_classes=C, weight=w, softmax=False))
    check("bf16_int8", out, _dice_loss_ref(x, t, C, weight=w, softmax=False),
          rtol=1e-3, atol=1e-5)

    print("KERNEL_OK")
</pallas_src>

<mosaic_0001>
module attributes {stable_mosaic.version = 11 : i64} {
  func.func @_dice_sums_kernel(%arg0: i32, %arg1: i32, %arg2: i32, %arg3: memref<1x4x2x128xf32, #tpu.memory_space<vmem>>, %arg4: memref<1x2x128xi32, #tpu.memory_space<vmem>>, %arg5: memref<1x1x4x3xf32, #tpu.memory_space<vmem>>, %arg6: memref<4x1x128xf32, #tpu.memory_space<vmem>>, %arg7: memref<4x1x128xf32, #tpu.memory_space<vmem>>, %arg8: memref<4x1x128xf32, #tpu.memory_space<vmem>>) attributes {dimension_semantics = [#tpu.dimension_semantics<parallel>, #tpu.dimension_semantics<parallel>, #tpu.dimension_semantics<arbitrary>], iteration_bounds = array<i64: 1, 2, 1>, scalar_prefetch = 0 : i64, scratch_operands = 3 : i64, tpu.core_type = #tpu.core_type<tc>, window_params = [{transform_indices = @transform_0, window_bounds = array<i64: 1, 4, 2, 128>}, {transform_indices = @transform_1, window_bounds = array<i64: 1, 2, 128>}, {transform_indices = @transform_2, window_bounds = array<i64: 1, 1, 4, 3>}]} {
    %c0_i32 = arith.constant 0 : i32
    %0 = arith.cmpi eq, %arg2, %c0_i32 : i32
    %1 = arith.extui %0 : i1 to i32
    %c0_i32_0 = arith.constant 0 : i32
    %2 = arith.cmpi ne, %1, %c0_i32_0 : i32
    scf.if %2 {
      %cst_106 = arith.constant 0.000000e+00 : f32
      %140 = vector.broadcast %cst_106 : f32 to vector<4x1x128xf32>
      %c0_107 = arith.constant 0 : index
      %c0_108 = arith.constant 0 : index
      %c0_109 = arith.constant 0 : index
      %141 = vector.load %arg6[%c0_107, %c0_108, %c0_109] : memref<4x1x128xf32, #tpu.memory_space<vmem>>, vector<4x1x128xf32>
      tpu.vector_store %arg6[%c0_107, %c0_108, %c0_109], %140 {strides = array<i32>} : memref<4x1x128xf32, #tpu.memory_space<vmem>>, vector<4x1x128xf32>,
      %cst_110 = arith.constant 0.000000e+00 : f32
      %142 = vector.broadcast %cst_110 : f32 to vector<4x1x128xf32>
      %c0_111 = arith.constant 0 : index
      %c0_112 = arith.constant 0 : index
      %c0_113 = arith.constant 0 : index
      %143 = vector.load %arg7[%c0_111, %c0_112, %c0_113] : memref<4x1x128xf32, #tpu.memory_space<vmem>>, vector<4x1x128xf32>
      tpu.vector_store %arg7[%c0_111, %c0_112, %c0_113], %142 {strides = array<i32>} : memref<4x1x128xf32, #tpu.memory_space<vmem>>, vector<4x1x128xf32>,
      %cst_114 = arith.constant 0.000000e+00 : f32
      %144 = vector.broadcast %cst_114 : f32 to vector<4x1x128xf32>
      %c0_115 = arith.constant 0 : index
      %c0_116 = arith.constant 0 : index
      %c0_117 = arith.constant 0 : index
      %145 = vector.load %arg8[%c0_115, %c0_116, %c0_117] : memref<4x1x128xf32, #tpu.memory_space<vmem>>, vector<4x1x128xf32>
      tpu.vector_store %arg8[%c0_115, %c0_116, %c0_117], %144 {strides = array<i32>} : memref<4x1x128xf32, #tpu.memory_space<vmem>>, vector<4x1x128xf32>,
    } else {
    }
    %c0 = arith.constant 0 : index
    %c0_1 = arith.constant 0 : index
    %c0_2 = arith.constant 0 : index
    %3 = vector.load %arg4[%c0, %c0_1, %c0_2] : memref<1x2x128xi32, #tpu.memory_space<vmem>>, vector<1x2x128xi32>
    %4 = vector.shape_cast %3 : vector<1x2x128xi32> to vector<2x128xi32>
    %c0_3 = arith.constant 0 : index
    %c0_4 = arith.constant 0 : index
    %c0_5 = arith.constant 0 : index
    %c0_6 = arith.constant 0 : index
    %5 = vector.load %arg3[%c0_3, %c0_4, %c0_5, %c0_6] : memref<1x4x2x128xf32, #tpu.memory_space<vmem>>, vector<1x1x2x128xf32>
    %6 = vector.shape_cast %5 : vector<1x1x2x128xf32> to vector<2x128xf32>
    %c0_i32_7 = arith.constant 0 : i32
    %7 = vector.broadcast %c0_i32_7 : i32 to vector<2x128xi32>
    %8 = arith.cmpi eq, %4, %7 : vector<2x128xi32>
    %9 = arith.extui %8 : vector<2x128xi1> to vector<2x128xi32>
    %10 = arith.sitofp %9 : vector<2x128xi32> to vector<2x128xf32>
    %cst = arith.constant 0.000000e+00 : f32
    %11 = vector.broadcast %cst : f32 to vector<2x128xf32>
    %12 = arith.select %8, %6, %11 : vector<2x128xi1>, vector<2x128xf32>
    %13 = vector.shape_cast %12 : vector<2x128xf32> to vector<2x1x128xf32>
    %cst_8 = arith.constant dense<0.000000e+00> : vector<1x128xf32>
    %14 = vector.multi_reduction <add>, %13, %cst_8 [0] : vector<2x1x128xf32> to vector<1x128xf32>
    %15 = arith.mulf %6, %6 : vector<2x128xf32>
    %16 = vector.shape_cast %15 : vector<2x128xf32> to vector<2x1x128xf32>
    %cst_9 = arith.constant dense<0.000000e+00> : vector<1x128xf32>
    %17 = vector.multi_reduction <add>, %16, %cst_9 [0] : vector<2x1x128xf32> to vector<1x128xf32>
    %18 = vector.shape_cast %10 : vector<2x128xf32> to vector<2x1x128xf32>
    %cst_10 = arith.constant dense<0.000000e+00> : vector<1x128xf32>
    %19 = vector.multi_reduction <add>, %18, %cst_10 [0] : vector<2x1x128xf32> to vector<1x128xf32>
    %c0_11 = arith.constant 0 : index
    %c0_12 = arith.constant 0 : index
    %c0_13 = arith.constant 0 : index
    %20 = vector.load %arg6[%c0_11, %c0_12, %c0_13] : memref<4x1x128xf32, #tpu.memory_space<vmem>>, vector<1x1x128xf32>
    %21 = vector.shape_cast %20 : vector<1x1x128xf32> to vector<1x128xf32>
    %22 = arith.addf %21, %14 : vector<1x128xf32>
    %c0_14 = arith.constant 0 : index
    %c0_15 = arith.constant 0 : index
    %c0_16 = arith.constant 0 : index
    %23 = vector.load %arg6[%c0_14, %c0_15, %c0_16] : memref<4x1x128xf32, #tpu.memory_space<vmem>>, vector<1x1x128xf32>
    %24 = vector.shape_cast %23 : vector<1x1x128xf32> to vector<1x128xf32>
    %25 = vector.shape_cast %22 : vector<1x128xf32> to vector<1x1x128xf32>
    tpu.vector_store %arg6[%c0_14, %c0_15, %c0_16], %25 {strides = array<i32>} : memref<4x1x128xf32, #tpu.memory_space<vmem>>, vector<1x1x128xf32>,
    %c0_17 = arith.constant 0 : index
    %c0_18 = arith.constant 0 : index
    %c0_19 = arith.constant 0 : index
    %26 = vector.load %arg7[%c0_17, %c0_18, %c0_19] : memref<4x1x128xf32, #tpu.memory_space<vmem>>, vector<1x1x128xf32>
    %27 = vector.shape_cast %26 : vector<1x1x128xf32> to vector<1x128xf32>
    %28 = arith.addf %27, %17 : vector<1x128xf32>
    %c0_20 = arith.constant 0 : index
    %c0_21 = arith.constant 0 : index
    %c0_22 = arith.constant 0 : index
    %29 = vector.load %arg7[%c0_20, %c0_21, %c0_22] : memref<4x1x128xf32, #tpu.memory_space<vmem>>, vector<1x1x128xf32>
    %30 = vector.shape_cast %29 : vector<1x1x128xf32> to vector<1x128xf32>
    %31 = vector.shape_cast %28 : vector<1x128xf32> to vector<1x1x128xf32>
    tpu.vector_store %arg7[%c0_20, %c0_21, %c0_22], %31 {strides = array<i32>} : memref<4x1x128xf32, #tpu.memory_space<vmem>>, vector<1x1x128xf32>,
    %c0_23 = arith.constant 0 : index
    %c0_24 = arith.constant 0 : index
    %c0_25 = arith.constant 0 : index
    %32 = vector.load %arg8[%c0_23, %c0_24, %c0_25] : memref<4x1x128xf32, #tpu.memory_space<vmem>>, vector<1x1x128xf32>
    %33 = vector.shape_cast %32 : vector<1x1x128xf32> to vector<1x128xf32>
    %34 = arith.addf %33, %19 : vector<1x128xf32>
    %c0_26 = arith.constant 0 : index
    %c0_27 = arith.constant 0 : index
    %c0_28 = arith.constant 0 : index
    %35 = vector.load %arg8[%c0_26, %c0_27, %c0_28] : memref<4x1x128xf32, #tpu.memory_space<vmem>>, vector<1x1x128xf32>
    %36 = vector.shape_cast %35 : vector<1x1x128xf32> to vector<1x128xf32>
    %37 = vector.shape_cast %34 : vector<1x128xf32> to vector<1x1x128xf32>
    tpu.vector_store %arg8[%c0_26, %c0_27, %c0_28], %37 {strides = array<i32>} : memref<4x1x128xf32, #tpu.memory_space<vmem>>, vector<1x1x128xf32>,
    %c0_29 = arith.constant 0 : index
    %c1 = arith.constant 1 : index
    %c0_30 = arith.constant 0 : index
    %c0_31 = arith.constant 0 : index
    %38 = vector.load %arg3[%c0_29, %c1, %c0_30, %c0_31] : memref<1x4x2x128xf32, #tpu.memory_space<vmem>>, vector<1x1x2x128xf32>
    %39 = vector.shape_cast %38 : vector<1x1x2x128xf32> to vector<2x128xf32>
    %c1_i32 = arith.constant 1 : i32
    %40 = vector.broadcast %c1_i32 : i32 to vector<2x128xi32>
    %41 = arith.cmpi eq, %4, %40 : vector<2x128xi32>
    %42 = arith.extui %41 : vector<2x128xi1> to vector<2x128xi32>
    %43 = arith.sitofp %42 : vector<2x128xi32> to vector<2x128xf32>
    %cst_32 = arith.constant 0.000000e+00 : f32
    %44 = vector.broadcast %cst_32 : f32 to vector<2x128xf32>
    %45 = arith.select %41, %39, %44 : vector<2x128xi1>, vector<2x128xf32>
    %46 = vector.shape_cast %45 : vector<2x128xf32> to vector<2x1x128xf32>
    %cst_33 = arith.constant dense<0.000000e+00> : vector<1x128xf32>
    %47 = vector.multi_reduction <add>, %46, %cst_33 [0] : vector<2x1x128xf32> to vector<1x128xf32>
    %48 = arith.mulf %39, %39 : vector<2x128xf32>
    %49 = vector.shape_cast %48 : vector<2x128xf32> to vector<2x1x128xf32>
    %cst_34 = arith.constant dense<0.000000e+00> : vector<1x128xf32>
    %50 = vector.multi_reduction <add>, %49, %cst_34 [0] : vector<2x1x128xf32> to vector<1x128xf32>
    %51 = vector.shape_cast %43 : vector<2x128xf32> to vector<2x1x128xf32>
    %cst_35 = arith.constant dense<0.000000e+00> : vector<1x128xf32>
    %52 = vector.multi_reduction <add>, %51, %cst_35 [0] : vector<2x1x128xf32> to vector<1x128xf32>
    %c1_36 = arith.constant 1 : index
    %c0_37 = arith.constant 0 : index
    %c0_38 = arith.constant 0 : index
    %53 = vector.load %arg6[%c1_36, %c0_37, %c0_38] : memref<4x1x128xf32, #tpu.memory_space<vmem>>, vector<1x1x128xf32>
    %54 = vector.shape_cast %53 : vector<1x1x128xf32> to vector<1x128xf32>
    %55 = arith.addf %54, %47 : vector<1x128xf32>
    %c1_39 = arith.constant 1 : index
    %c0_40 = arith.constant 0 : index
    %c0_41 = arith.constant 0 : index
    %56 = vector.load %arg6[%c1_39, %c0_40, %c0_41] : memref<4x1x128xf32, #tpu.memory_space<vmem>>, vector<1x1x128xf32>
    %57 = vector.shape_cast %56 : vector<1x1x128xf32> to vector<1x128xf32>
    %58 = vector.shape_cast %55 : vector<1x128xf32> to vector<1x1x128xf32>
    tpu.vector_store %arg6[%c1_39, %c0_40, %c0_41], %58 {strides = array<i32>} : memref<4x1x128xf32, #tpu.memory_space<vmem>>, vector<1x1x128xf32>,
    %c1_42 = arith.constant 1 : index
    %c0_43 = arith.constant 0 : index
    %c0_44 = arith.constant 0 : index
    %59 = vector.load %arg7[%c1_42, %c0_43, %c0_44] : memref<4x1x128xf32, #tpu.memory_space<vmem>>, vector<1x1x128xf32>
    %60 = vector.shape_cast %59 : vector<1x1x128xf32> to vector<1x128xf32>
    %61 = arith.addf %60, %50 : vector<1x128xf32>
    %c1_45 = arith.constant 1 : index
    %c0_46 = arith.constant 0 : index
    %c0_47 = arith.constant 0 : index
    %62 = vector.load %arg7[%c1_45, %c0_46, %c0_47] : memref<4x1x128xf32, #tpu.memory_space<vmem>>, vector<1x1x128xf32>
    %63 = vector.shape_cast %62 : vector<1x1x128xf32> to vector<1x128xf32>
    %64 = vector.shape_cast %61 : vector<1x128xf32> to vector<1x1x128xf32>
    tpu.vector_store %arg7[%c1_45, %c0_46, %c0_47], %64 {strides = array<i32>} : memref<4x1x128xf32, #tpu.memory_space<vmem>>, vector<1x1x128xf32>,
    %c1_48 = arith.constant 1 : index
    %c0_49 = arith.constant 0 : index
    %c0_50 = arith.constant 0 : index
    %65 = vector.load %arg8[%c1_48, %c0_49, %c0_50] : memref<4x1x128xf32, #tpu.memory_space<vmem>>, vector<1x1x128xf32>
    %66 = vector.shape_cast %65 : vector<1x1x128xf32> to vector<1x128xf32>
    %67 = arith.addf %66, %52 : vector<1x128xf32>
    %c1_51 = arith.constant 1 : index
    %c0_52 = arith.constant 0 : index
    %c0_53 = arith.constant 0 : index
    %68 = vector.load %arg8[%c1_51, %c0_52, %c0_53] : memref<4x1x128xf32, #tpu.memory_space<vmem>>, vector<1x1x128xf32>
    %69 = vector.shape_cast %68 : vector<1x1x128xf32> to vector<1x128xf32>
    %70 = vector.shape_cast %67 : vector<1x128xf32> to vector<1x1x128xf32>
    tpu.vector_store %arg8[%c1_51, %c0_52, %c0_53], %70 {strides = array<i32>} : memref<4x1x128xf32, #tpu.memory_space<vmem>>, vector<1x1x128xf32>,
    %c0_54 = arith.constant 0 : index
    %c2 = arith.constant 2 : index
    %c0_55 = arith.constant 0 : index
    %c0_56 = arith.constant 0 : index
    %71 = vector.load %arg3[%c0_54, %c2, %c0_55, %c0_56] : memref<1x4x2x128xf32, #tpu.memory_space<vmem>>, vector<1x1x2x128xf32>
    %72 = vector.shape_cast %71 : vector<1x1x2x128xf32> to vector<2x128xf32>
    %c2_i32 = arith.constant 2 : i32
    %73 = vector.broadcast %c2_i32 : i32 to vector<2x128xi32>
    %74 = arith.cmpi eq, %4, %73 : vector<2x128xi32>
    %75 = arith.extui %74 : vector<2x128xi1> to vector<2x128xi32>
    %76 = arith.sitofp %75 : vector<2x128xi32> to vector<2x128xf32>
    %cst_57 = arith.constant 0.000000e+00 : f32
    %77 = vector.broadcast %cst_57 : f32 to vector<2x128xf32>
    %78 = arith.select %74, %72, %77 : vector<2x128xi1>, vector<2x128xf32>
    %79 = vector.shape_cast %78 : vector<2x128xf32> to vector<2x1x128xf32>
    %cst_58 = arith.constant dense<0.000000e+00> : vector<1x128xf32>
    %80 = vector.multi_reduction <add>, %79, %cst_58 [0] : vector<2x1x128xf32> to vector<1x128xf32>
    %81 = arith.mulf %72, %72 : vector<2x128xf32>
    %82 = vector.shape_cast %81 : vector<2x128xf32> to vector<2x1x128xf32>
    %cst_59 = arith.constant dense<0.000000e+00> : vector<1x128xf32>
    %83 = vector.multi_reduction <add>, %82, %cst_59 [0] : vector<2x1x128xf32> to vector<1x128xf32>
    %84 = vector.shape_cast %76 : vector<2x128xf32> to vector<2x1x128xf32>
    %cst_60 = arith.constant dense<0.000000e+00> : vector<1x128xf32>
    %85 = vector.multi_reduction <add>, %84, %cst_60 [0] : vector<2x1x128xf32> to vector<1x128xf32>
    %c2_61 = arith.constant 2 : index
    %c0_62 = arith.constant 0 : index
    %c0_63 = arith.constant 0 : index
    %86 = vector.load %arg6[%c2_61, %c0_62, %c0_63] : memref<4x1x128xf32, #tpu.memory_space<vmem>>, vector<1x1x128xf32>
    %87 = vector.shape_cast %86 : vector<1x1x128xf32> to vector<1x128xf32>
    %88 = arith.addf %87, %80 : vector<1x128xf32>
    %c2_64 = arith.constant 2 : index
    %c0_65 = arith.constant 0 : index
    %c0_66 = arith.constant 0 : index
    %89 = vector.load %arg6[%c2_64, %c0_65, %c0_66] : memref<4x1x128xf32, #tpu.memory_space<vmem>>, vector<1x1x128xf32>
    %90 = vector.shape_cast %89 : vector<1x1x128xf32> to vector<1x128xf32>
    %91 = vector.shape_cast %88 : vector<1x128xf32> to vector<1x1x128xf32>
    tpu.vector_store %arg6[%c2_64, %c0_65, %c0_66], %91 {strides = array<i32>} : memref<4x1x128xf32, #tpu.memory_space<vmem>>, vector<1x1x128xf32>,
    %c2_67 = arith.constant 2 : index
    %c0_68 = arith.constant 0 : index
    %c0_69 = arith.constant 0 : index
    %92 = vector.load %arg7[%c2_67, %c0_68, %c0_69] : memref<4x1x128xf32, #tpu.memory_space<vmem>>, vector<1x1x128xf32>
    %93 = vector.shape_cast %92 : vector<1x1x128xf32> to vector<1x128xf32>
    %94 = arith.addf %93, %83 : vector<1x128xf32>
    %c2_70 = arith.constant 2 : index
    %c0_71 = arith.constant 0 : index
    %c0_72 = arith.constant 0 : index
    %95 = vector.load %arg7[%c2_70, %c0_71, %c0_72] : memref<4x1x128xf32, #tpu.memory_space<vmem>>, vector<1x1x128xf32>
    %96 = vector.shape_cast %95 : vector<1x1x128xf32> to vector<1x128xf32>
    %97 = vector.shape_cast %94 : vector<1x128xf32> to vector<1x1x128xf32>
    tpu.vector_store %arg7[%c2_70, %c0_71, %c0_72], %97 {strides = array<i32>} : memref<4x1x128xf32, #tpu.memory_space<vmem>>, vector<1x1x128xf32>,
    %c2_73 = arith.constant 2 : index
    %c0_74 = arith.constant 0 : index
    %c0_75 = arith.constant 0 : index
    %98 = vector.load %arg8[%c2_73, %c0_74, %c0_75] : memref<4x1x128xf32, #tpu.memory_space<vmem>>, vector<1x1x128xf32>
    %99 = vector.shape_cast %98 : vector<1x1x128xf32> to vector<1x128xf32>
    %100 = arith.addf %99, %85 : vector<1x128xf32>
    %c2_76 = arith.constant 2 : index
    %c0_77 = arith.constant 0 : index
    %c0_78 = arith.constant 0 : index
    %101 = vector.load %arg8[%c2_76, %c0_77, %c0_78] : memref<4x1x128xf32, #tpu.memory_space<vmem>>, vector<1x1x128xf32>
    %102 = vector.shape_cast %101 : vector<1x1x128xf32> to vector<1x128xf32>
    %103 = vector.shape_cast %100 : vector<1x128xf32> to vector<1x1x128xf32>
    tpu.vector_store %arg8[%c2_76, %c0_77, %c0_78], %103 {strides = array<i32>} : memref<4x1x128xf32, #tpu.memory_space<vmem>>, vector<1x1x128xf32>,
    %c0_79 = arith.constant 0 : index
    %c3 = arith.constant 3 : index
    %c0_80 = arith.constant 0 : index
    %c0_81 = arith.constant 0 : index
    %104 = vector.load %arg3[%c0_79, %c3, %c0_80, %c0_81] : memref<1x4x2x128xf32, #tpu.memory_space<vmem>>, vector<1x1x2x128xf32>
    %105 = vector.shape_cast %104 : vector<1x1x2x128xf32> to vector<2x128xf32>
    %c3_i32 = arith.constant 3 : i32
    %106 = vector.broadcast %c3_i32 : i32 to vector<2x128xi32>
    %107 = arith.cmpi eq, %4, %106 : vector<2x128xi32>
    %108 = arith.extui %107 : vector<2x128xi1> to vector<2x128xi32>
    %109 = arith.sitofp %108 : vector<2x128xi32> to vector<2x128xf32>
    %cst_82 = arith.constant 0.000000e+00 : f32
    %110 = vector.broadcast %cst_82 : f32 to vector<2x128xf32>
    %111 = arith.select %107, %105, %110 : vector<2x128xi1>, vector<2x128xf32>
    %112 = vector.shape_cast %111 : vector<2x128xf32> to vector<2x1x128xf32>
    %cst_83 = arith.constant dense<0.000000e+00> : vector<1x128xf32>
    %113 = vector.multi_reduction <add>, %112, %cst_83 [0] : vector<2x1x128xf32> to vector<1x128xf32>
    %114 = arith.mulf %105, %105 : vector<2x128xf32>
    %115 = vector.shape_cast %114 : vector<2x128xf32> to vector<2x1x128xf32>
    %cst_84 = arith.constant dense<0.000000e+00> : vector<1x128xf32>
    %116 = vector.multi_reduction <add>, %115, %cst_84 [0] : vector<2x1x128xf32> to vector<1x128xf32>
    %117 = vector.shape_cast %109 : vector<2x128xf32> to vector<2x1x128xf32>
    %cst_85 = arith.constant dense<0.000000e+00> : vector<1x128xf32>
    %118 = vector.multi_reduction <add>, %117, %cst_85 [0] : vector<2x1x128xf32> to vector<1x128xf32>
    %c3_86 = arith.constant 3 : index
    %c0_87 = arith.constant 0 : index
    %c0_88 = arith.constant 0 : index
    %119 = vector.load %arg6[%c3_86, %c0_87, %c0_88] : memref<4x1x128xf32, #tpu.memory_space<vmem>>, vector<1x1x128xf32>
    %120 = vector.shape_cast %119 : vector<1x1x128xf32> to vector<1x128xf32>
    %121 = arith.addf %120, %113 : vector<1x128xf32>
    %c3_89 = arith.constant 3 : index
    %c0_90 = arith.constant 0 : index
    %c0_91 = arith.constant 0 : index
    %122 = vector.load %arg6[%c3_89, %c0_90, %c0_91] : memref<4x1x128xf32, #tpu.memory_space<vmem>>, vector<1x1x128xf32>
    %123 = vector.shape_cast %122 : vector<1x1x128xf32> to vector<1x128xf32>
    %124 = vector.shape_cast %121 : vector<1x128xf32> to vector<1x1x128xf32>
    tpu.vector_store %arg6[%c3_89, %c0_90, %c0_91], %124 {strides = array<i32>} : memref<4x1x128xf32, #tpu.memory_space<vmem>>, vector<1x1x128xf32>,
    %c3_92 = arith.constant 3 : index
    %c0_93 = arith.constant 0 : index
    %c0_94 = arith.constant 0 : index
    %125 = vector.load %arg7[%c3_92, %c0_93, %c0_94] : memref<4x1x128xf32, #tpu.memory_space<vmem>>, vector<1x1x128xf32>
    %126 = vector.shape_cast %125 : vector<1x1x128xf32> to vector<1x128xf32>
    %127 = arith.addf %126, %116 : vector<1x128xf32>
    %c3_95 = arith.constant 3 : index
    %c0_96 = arith.constant 0 : index
    %c0_97 = arith.constant 0 : index
    %128 = vector.load %arg7[%c3_95, %c0_96, %c0_97] : memref<4x1x128xf32, #tpu.memory_space<vmem>>, vector<1x1x128xf32>
    %129 = vector.shape_cast %128 : vector<1x1x128xf32> to vector<1x128xf32>
    %130 = vector.shape_cast %127 : vector<1x128xf32> to vector<1x1x128xf32>
    tpu.vector_store %arg7[%c3_95, %c0_96, %c0_97], %130 {strides = array<i32>} : memref<4x1x128xf32, #tpu.memory_space<vmem>>, vector<1x1x128xf32>,
    %c3_98 = arith.constant 3 : index
    %c0_99 = arith.constant 0 : index
    %c0_100 = arith.constant 0 : index
    %131 = vector.load %arg8[%c3_98, %c0_99, %c0_100] : memref<4x1x128xf32, #tpu.memory_space<vmem>>, vector<1x1x128xf32>
    %132 = vector.shape_cast %131 : vector<1x1x128xf32> to vector<1x128xf32>
    %133 = arith.addf %132, %118 : vector<1x128xf32>
    %c3_101 = arith.constant 3 : index
    %c0_102 = arith.constant 0 : index
    %c0_103 = arith.constant 0 : index
    %134 = vector.load %arg8[%c3_101, %c0_102, %c0_103] : memref<4x1x128xf32, #tpu.memory_space<vmem>>, vector<1x1x128xf32>
    %135 = vector.shape_cast %134 : vector<1x1x128xf32> to vector<1x128xf32>
    %136 = vector.shape_cast %133 : vector<1x128xf32> to vector<1x1x128xf32>
    tpu.vector_store %arg8[%c3_101, %c0_102, %c0_103], %136 {strides = array<i32>} : memref<4x1x128xf32, #tpu.memory_space<vmem>>, vector<1x1x128xf32>,
    %c0_i32_104 = arith.constant 0 : i32
    %137 = arith.cmpi eq, %arg2, %c0_i32_104 : i32
    %138 = arith.extui %137 : i1 to i32
    %c0_i32_105 = arith.constant 0 : i32
    %139 = arith.cmpi ne, %138, %c0_i32_105 : i32
    scf.if %139 {
      %c0_106 = arith.constant 0 : index
      %c0_107 = arith.constant 0 : index
      %c0_108 = arith.constant 0 : index
      %140 = vector.load %arg6[%c0_106, %c0_107, %c0_108] : memref<4x1x128xf32, #tpu.memory_space<vmem>>, vector<4x1x128xf32>
      %cst_109 = arith.constant dense<0.000000e+00> : vector<4x1xf32>
      %141 = vector.multi_reduction <add>, %140, %cst_109 [2] : vector<4x1x128xf32> to vector<4x1xf32>
      %cst_110 = arith.constant dense<0.000000e+00> : vector<4xf32>
      %142 = vector.multi_reduction <add>, %141, %cst_110 [1] : vector<4x1xf32> to vector<4xf32>
      %143 = vector.shape_cast %142 : vector<4xf32> to vector<4x1xf32>
      %c0_111 = arith.constant 0 : index
      %c0_112 = arith.constant 0 : index
      %c0_113 = arith.constant 0 : index
      %c0_114 = arith.constant 0 : index
      %144 = vector.load %arg5[%c0_111, %c0_112, %c0_113, %c0_114] : memref<1x1x4x3xf32, #tpu.memory_space<vmem>>, vector<1x1x4x1xf32>
      %145 = vector.shape_cast %144 : vector<1x1x4x1xf32> to vector<4x1xf32>
      %146 = vector.shape_cast %143 : vector<4x1xf32> to vector<1x1x4x1xf32>
      tpu.vector_store %arg5[%c0_111, %c0_112, %c0_113, %c0_114], %146 {strides = array<i32>} : memref<1x1x4x3xf32, #tpu.memory_space<vmem>>, vector<1x1x4x1xf32>,
      %c0_115 = arith.constant 0 : index
      %c0_116 = arith.constant 0 : index
      %c0_117 = arith.constant 0 : index
      %147 = vector.load %arg7[%c0_115, %c0_116, %c0_117] : memref<4x1x128xf32, #tpu.memory_space<vmem>>, vector<4x1x128xf32>
      %cst_118 = arith.constant dense<0.000000e+00> : vector<4x1xf32>
      %148 = vector.multi_reduction <add>, %147, %cst_118 [2] : vector<4x1x128xf32> to vector<4x1xf32>
      %cst_119 = arith.constant dense<0.000000e+00> : vector<4xf32>
      %149 = vector.multi_reduction <add>, %148, %cst_119 [1] : vector<4x1xf32> to vector<4xf32>
      %150 = vector.shape_cast %149 : vector<4xf32> to vector<4x1xf32>
      %c0_120 = arith.constant 0 : index
      %c0_121 = arith.constant 0 : index
      %c0_122 = arith.constant 0 : index
      %c1_123 = arith.constant 1 : index
      %151 = vector.load %arg5[%c0_120, %c0_121, %c0_122, %c1_123] : memref<1x1x4x3xf32, #tpu.memory_space<vmem>>, vector<1x1x4x1xf32>
      %152 = vector.shape_cast %151 : vector<1x1x4x1xf32> to vector<4x1xf32>
      %153 = vector.shape_cast %150 : vector<4x1xf32> to vector<1x1x4x1xf32>
      tpu.vector_store %arg5[%c0_120, %c0_121, %c0_122, %c1_123], %153 {strides = array<i32>} : memref<1x1x4x3xf32, #tpu.memory_space<vmem>>, vector<1x1x4x1xf32>,
      %c0_124 = arith.constant 0 : index
      %c0_125 = arith.constant 0 : index
      %c0_126 = arith.constant 0 : index
      %154 = vector.load %arg8[%c0_124, %c0_125, %c0_126] : memref<4x1x128xf32, #tpu.memory_space<vmem>>, vector<4x1x128xf32>
      %cst_127 = arith.constant dense<0.000000e+00> : vector<4x1xf32>
      %155 = vector.multi_reduction <add>, %154, %cst_127 [2] : vector<4x1x128xf32> to vector<4x1xf32>
      %cst_128 = arith.constant dense<0.000000e+00> : vector<4xf32>
      %156 = vector.multi_reduction <add>, %155, %cst_128 [1] : vector<4x1xf32> to vector<4xf32>
      %157 = vector.shape_cast %156 : vector<4xf32> to vector<4x1xf32>
      %c0_129 = arith.constant 0 : index
      %c0_130 = arith.constant 0 : index
      %c0_131 = arith.constant 0 : index
      %c2_132 = arith.constant 2 : index
      %158 = vector.load %arg5[%c0_129, %c0_130, %c0_131, %c2_132] : memref<1x1x4x3xf32, #tpu.memory_space<vmem>>, vector<1x1x4x1xf32>
      %159 = vector.shape_cast %158 : vector<1x1x4x1xf32> to vector<4x1xf32>
      %160 = vector.shape_cast %157 : vector<4x1xf32> to vector<1x1x4x1xf32>
      tpu.vector_store %arg5[%c0_129, %c0_130, %c0_131, %c2_132], %160 {strides = array<i32>} : memref<1x1x4x3xf32, #tpu.memory_space<vmem>>, vector<1x1x4x1xf32>,
    } else {
    }
    return
  }
  func.func @transform_0(%arg0: i32, %arg1: i32, %arg2: i32) -> (i32, i32, i32, i32) {
    %c1_i32 = arith.constant 1 : i32
    %0 = arith.muli %arg0, %c1_i32 : i32
    %1 = arith.addi %0, %arg2 : i32
    %c0_i32 = arith.constant 0 : i32
    %c0_i32_0 = arith.constant 0 : i32
    %c0_i32_1 = arith.constant 0 : i32
    return %arg1, %c0_i32, %1, %c0_i32_0 : i32, i32, i32, i32
  }
  func.func @transform_1(%arg0: i32, %arg1: i32, %arg2: i32) -> (i32, i32, i32) {
    %c1_i32 = arith.constant 1 : i32
    %0 = arith.muli %arg0, %c1_i32 : i32
    %1 = arith.addi %0, %arg2 : i32
    %c0_i32 = arith.constant 0 : i32
    %c0_i32_0 = arith.constant 0 : i32
    return %arg1, %1, %c0_i32 : i32, i32, i32
  }
  func.func @transform_2(%arg0: i32, %arg1: i32, %arg2: i32) -> (i32, i32, i32, i32) {
    %c0_i32 = arith.constant 0 : i32
    %c0_i32_0 = arith.constant 0 : i32
    %c0_i32_1 = arith.constant 0 : i32
    return %arg0, %arg1, %c0_i32, %c0_i32_0 : i32, i32, i32, i32
  }
}

</mosaic_0001>

<bundles_post_ra>
// kernel: tpu_custom_call.1
= control target key start
LH: loop header
LB: loop body
LE: loop exit
PB: predicated region body
PF: predicated region fallthrough
CT: control target
= control target key end

     0   :  { %7 = vsyncpa [#allocation6], 0  ;;  %s1046_s0 = inlined_call_operand.hbm [shape: f32[2,4,2,128], index: 0, kind: input, shape index: {}]   ;;  %s1047_s1 = inlined_call_operand.hbm [shape: s32[2,2,128], index: 1, kind: input, shape index: {}]   ;;  %s1048_s2 = inlined_call_operand.vmem [shape: f32[1,2,4,3], index: 2, kind: output, shape index: {}]  }
   0x1   :  { %9 = vsyncpa [#allocation6 + $0x1], 0 }
   0x2   :  { %10 = vsyncpa [#allocation8], 0 }
   0x3   :  { %12 = vsyncpa [#allocation8 + $0x1], 0  ;;  %s853_s9 = smov 0   ;;  %s855_s10 = smov 0  }
   0x4   :  { %s857_s11 = smov 0   ;;  %s859_s12 = smov 0  }
   0x5   :  { %s861_s13 = smov 0   ;;  %s863_s14 = smov 0  }
   0x6 LB: > { %s633_s15 = sadd.s32 4294967295, %s833_s14   ;;  %s33_s16 = sadd.s32 1, %s829_s13  ;;  %s833_s14 = sphi %s863_s14, %s18_s14   ;;  %s829_s13 = sphi %s861_s13, %s1056_s13   ;;  %s825_s12 = sphi %s859_s12, %s1055_s12   ;;  %s821_s11 = sphi %s857_s11, %s1054_s11   ;;  %s817_s10 = sphi %s855_s10, %s1053_s10   ;;  %s813_s9 = sphi %s853_s9, %s1052_s9  }
   0x7   : > { %p35_p0 = scmp.ge.s32.totalorder %s33_s16, 2  ;;  %s48_s17 = sadd.s32 1, %s821_s11 }
   0x8   : > { %p55_p1 = scmp.ne.s32.totalorder %s821_s11, %s817_s10  ;;  %p56_p2 = scmp.eq.s32.totalorder %s833_s14, 0 }
   0x9   : > { %s1058_s16 = smov (%p35_p0, %s33_s16), 0  ;;  %p61_p4 = scmp.ne.s32.totalorder %s817_s10, %s813_s9 }
   0xa   : > { %p889_p3 = por %p56_p2, %p55_p1  ;;  %s43_s19 = ssub.s32 %s829_s13, %s1058_s16 }
   0xb   : > { %p62_p5 = scmp.eq.s32.totalorder %s633_s15, 0  ;;  %p46_p6 = scmp.eq.s32.totalorder %s43_s19, 0 }
   0xc   : > { %p667_p8 = scmp.lt.s32.totalorder %s833_s14, 2  ;;  %s143_s22 = sand.u32 1, %s821_s11  }
   0xd   : > { %p896_p7 = por %p62_p5, %p61_p4  ;;  %s655_s23 = sshll.u32 %s829_s13, 3 }
   0xe   : > { %s902_s21 = scalar_select %p46_p6, %s821_s11, %s48_s17  }
   0xf   : > { %s637_s24 = sshll.u32 %s143_s22, 3  ;;  %s154_s27 = scalar_lea.hbm %s1046_s0, %s655_s23 }
  0x10   : > { %s155_s28 = sshll.u32 %s154_s27, 4  ;;  %s147_s29 = scalar_lea.vmem [#allocation5], %s637_s24  ;;  %s156_s28 = int_to_ptr.hbm [resolvable:$true] %s155_s28 }
  0x11   : > { %s157_s30 = sshll.u32 %s147_s29, 4  ;;  %p911_p9 = pnand %p667_p8, %p889_p3  ;;  %s158_s30 = int_to_ptr.vmem [resolvable:$true] %s157_s30 }
  0x12   : > { %p642_p10 = scmp.ge.s32.totalorder %s833_s14, 1  ;;  %p186_p11 = scmp.lt.s32.totalorder %s833_s14, 3 }
  0x13   : > { %s144_s4 = scalar_lea.sflag [#allocation6], %s143_s22  ;;  %s835_s5 = smov 32  }
  0x14   : > { %s836_s6 = smov 2   ;;  %p187_p12 = pnand %p642_p10, %p186_p11 }
  0x15   : > { %663 = dma.hbm_to_vmem [thread:$0]  (!%p911_p9), %s156_s28, 128, %s158_s30, %s144_s4, %s835_s5, %s835_s5, %s836_s6  }
  0x16   : > { %s640_s7 = sshll.u32 %s143_s22, 1  ;;  %s641_s8 = sshll.u32 %s829_s13, 1 }
  0x17   : > { %s177_s17 = scalar_lea.hbm %s1047_s1, %s641_s8  ;;  %s171_s19 = scalar_lea.vmem [#allocation7], %s640_s7 }
  0x18   : > { %s179_s18 = sshll.u32 %s177_s17, 4  ;;  %s181_s23 = sshll.u32 %s171_s19, 4  ;;  %s180_s18 = int_to_ptr.hbm [resolvable:$true] %s179_s18  ;;  %s182_s23 = int_to_ptr.vmem [resolvable:$true] %s181_s23 }
  0x19   : > { %s168_s24 = scalar_lea.sflag [#allocation8], %s143_s22  ;;  %190 = sbr.rel (%p187_p12) target bundleno = 202 (0xca), region = 28 }
  0x1a   : > { %666 = dma.hbm_to_vmem [thread:$0]  (!%p911_p9), %s180_s18, 32, %s182_s23, %s168_s24  }
  0x1b   : > { %s192_s25 = sand.u32 (!%p187_p12), 1, %s817_s10  }
  0x1c   : > { %s643_s26 = sshll.u32 (!%p187_p12), %s192_s25, 3  ;;  %s193_s27 = scalar_lea.sflag (!%p187_p12), [#allocation6], %s192_s25 }
  0x1d   : > { %s926_s28 = scalar_lea.vmem (!%p187_p12), [#allocation5], %s643_s26 }
  0x1e   : > { %804 = dma.done.wait (%p896_p7), %s193_s27, 128  }
  0x1f   : > { %806 = vsyncadd (%p896_p7), %s193_s27, 4294967168  ;;  %s644_s29 = sshll.u32 %s192_s25, 1  ;;  %s203_s30 = scalar_lea.sflag [#allocation8], %s192_s25 }
  0x20   : > { %s206_s4 = scalar_lea.vmem [#allocation7], %s644_s29 }
  0x21   : > { %808 = dma.done.wait (%p896_p7), %s203_s30, 32  }
  0x22   : > { %810 = vsyncadd (%p896_p7), %s203_s30, 4294967264  ;;  %v837_v0 = vmov 0.0   ;;  %vm271_vm0 = vcmask 1040384   ;;  %v647_v1 = vld [vmem:[%s926_s28 + $0x2] sm:$0x3]  ;;  %p240_p13 = scmp.lt.s32.totalorder %s825_s12, 1 }
  0x23   : > { %255 = vst [vmem:[#allocation3 + $0x1] sm:$0x1] %v837_v0  ;;  %v944_v2 = vld [vmem:[%s206_s4] sm:$0x3]  ;;  %v309_v3 = vmul.f32 %v647_v1, %v647_v1  ;;  %v651_v4 = vld [vmem:[%s926_s28 + $0x6] sm:$0x3] }
  0x24   : > { %250 = vst [vmem:[#allocation2] sm:$0x1] %v837_v0  ;;  %vm373_vm1 = vcmp.eq.s32.totalorder %v944_v2, 3  ;;  %vm299_vm2 = vcmp.eq.s32.totalorder %v944_v2, 1  ;;  %v649_v5 = vld [vmem:[%s926_s28 + $0x4] sm:$0x3]  ;;  %v383_v18 = vmul.f32 %v651_v4, %v651_v4 }
  0x25   : > { %251 = vst [vmem:[#allocation2 + $0x1] sm:$0x1] %v837_v0  ;;  %v311_v6 = vrot.slane %v309_v3, 1  ;;  %v313_v7 = vsel %vm271_vm0, %v309_v3, 0.0  ;;  %v376_v9 = vsel %vm373_vm1, %v651_v4, 0.0  ;;  %v302_v10 = vsel %vm299_vm2, %v647_v1, 0.0 }
  0x26   : > { %252 = vst [vmem:[#allocation2 + $0x2] sm:$0x1] %v837_v0  ;;  %v378_v11 = vrot.slane %v376_v9, 1  ;;  %v380_v12 = vsel %vm271_vm0, %v376_v9, 0.0  ;;  %v304_v13 = vrot.slane %v302_v10, 1  ;;  %v306_v14 = vsel %vm271_vm0, %v302_v10, 0.0 }
  0x27   : > { %253 = vst [vmem:[#allocation2 + $0x3] sm:$0x1] %v837_v0  ;;  %v314_v15 = vsel %vm271_vm0, %v311_v6, 0.0  ;;  %v346_v17 = vmul.f32 %v649_v5, %v649_v5  ;;  %vm336_vm3 = vcmp.eq.s32.totalorder %v944_v2, 2  ;;  %v263_v31 = vld [vmem:[%s926_s28] sm:$0x3] }
  0x28   : > { %254 = vst [vmem:[#allocation3] sm:$0x1] %v837_v0  ;;  %v315_v19 = vadd.f32 %v314_v15, %v313_v7  ;;  %v381_v20 = vsel %vm271_vm0, %v378_v11, 0.0  ;;  %v307_v21 = vsel %vm271_vm0, %v304_v13, 0.0  ;;  %v339_v23 = vsel %vm336_vm3, %v649_v5, 0.0  ;;  %s1060_s12 = smov (!%p240_p13, %s825_s12), 1 }
  0x29   : > { %256 = vst [vmem:[#allocation3 + $0x2] sm:$0x1] %v837_v0  ;;  %v382_v24 = vadd.f32 %v381_v20, %v380_v12  ;;  %v308_v25 = vadd.f32 %v307_v21, %v306_v14  ;;  %v348_v26 = vrot.slane %v346_v17, 1  ;;  %v350_v27 = vsel %vm271_vm0, %v346_v17, 0.0  ;;  %s645_s20 = sshll.u32 %s1060_s12, 2 }
  0x2a   : > { %257 = vst [vmem:[#allocation3 + $0x3] sm:$0x1] %v837_v0  ;;  %v327_v8 = vld [vmem:[#allocation3 + $0x1] sm:$0x1]  ;;  %v341_v29 = vrot.slane %v339_v23, 1  ;;  %v343_v30 = vsel %vm271_vm0, %v339_v23, 0.0  ;;  %v275_v55 = vmul.f32 %v263_v31, %v263_v31  ;;  %s245_s5 = scalar_lea.vmem %s1048_s2, %s645_s20 }
  0x2b   : > { %258 = vst [vmem:[#allocation4] sm:$0x1] %v837_v0  ;;  %v328_v28 = vadd.f32 %v327_v8, %v315_v19  ;;  %vm264_vm4 = vcmp.eq.s32.totalorder %v944_v2, 0  ;;  %v351_v34 = vsel %vm271_vm0, %v348_v26, 0.0  ;;  %v288_v42 = vld [vmem:[#allocation2] sm:$0x1] }
  0x2c   : > { %259 = vst [vmem:[#allocation4 + $0x1] sm:$0x1] %v837_v0  ;;  %v323_v22 = vld [vmem:[#allocation2 + $0x1] sm:$0x1]  ;;  %v267_v37 = vsel %vm264_vm4, %v263_v31, 0.0  ;;  %v352_v38 = vadd.f32 %v351_v34, %v350_v27  ;;  %v344_v39 = vsel %vm271_vm0, %v341_v29, 0.0 }
  0x2d   : > { %260 = vst [vmem:[#allocation4 + $0x2] sm:$0x1] %v837_v0  ;;  %v324_v33 = vadd.f32 %v323_v22, %v308_v25  ;;  %v360_v36 = vld [vmem:[#allocation2 + $0x2] sm:$0x1]  ;;  %v269_v40 = vrot.slane %v267_v37, 1  ;;  %v272_v41 = vsel %vm271_vm0, %v267_v37, 0.0  ;;  %v345_v43 = vadd.f32 %v344_v39, %v343_v30 }
  0x2e   : > { %261 = vst [vmem:[#allocation4 + $0x3] sm:$0x1] %v837_v0  ;;  %v397_v16 = vld [vmem:[#allocation2 + $0x3] sm:$0x1]  ;;  %v385_v44 = vrot.slane %v383_v18, 1  ;;  %v387_v45 = vsel %vm271_vm0, %v383_v18, 0.0 }
  0x2f   : > { %v398_v32 = vadd.f32 %v397_v16, %v382_v24  ;;  %329 = vst [vmem:[#allocation3 + $0x1] sm:$0x1] %v328_v28  ;;  %v648_v46 = vsel %vm299_vm2, 1.0, %v837_v0  ;;  %v273_v48 = vsel %vm271_vm0, %v269_v40, 0.0  ;;  %v361_v51 = vadd.f32 %v360_v36, %v345_v43  ;;  %v291_v1 = vld [vmem:[#allocation3] sm:$0x1] }
  0x30   : > { %v364_v35 = vld [vmem:[#allocation3 + $0x2] sm:$0x1]  ;;  %325 = vst [vmem:[#allocation2 + $0x1] sm:$0x1] %v324_v33  ;;  %v317_v49 = vrot.slane %v648_v46, 1  ;;  %v319_v50 = vsel %vm271_vm0, %v648_v46, 0.0  ;;  %v274_v52 = vadd.f32 %v273_v48, %v272_v41 }
  0x31   : > { %399 = vst [vmem:[#allocation2 + $0x3] sm:$0x1] %v398_v32  ;;  %v365_v47 = vadd.f32 %v364_v35, %v352_v38  ;;  %v388_v53 = vsel %vm271_vm0, %v385_v44, 0.0  ;;  %v401_v54 = vld [vmem:[#allocation3 + $0x3] sm:$0x1]  ;;  %v650_v59 = vsel %vm336_vm3, 1.0, %v837_v0 }
  0x32   : > { %v389_v56 = vadd.f32 %v388_v53, %v387_v45  ;;  %v320_v57 = vsel %vm271_vm0, %v317_v49, 0.0  ;;  %362 = vst [vmem:[#allocation2 + $0x2] sm:$0x1] %v361_v51  ;;  %v289_v60 = vadd.f32 %v288_v42, %v274_v52  ;;  %v277_v62 = vrot.slane %v275_v55, 1  ;;  %v294_v23 = vld [vmem:[#allocation4] sm:$0x1] }
  0x33   : > { %366 = vst [vmem:[#allocation3 + $0x2] sm:$0x1] %v365_v47  ;;  %v331_v58 = vld [vmem:[#allocation4 + $0x1] sm:$0x1]  ;;  %v321_v61 = vadd.f32 %v320_v57, %v319_v50  ;;  %v279_v63 = vsel %vm271_vm0, %v275_v55, 0.0  ;;  %v354_v4 = vrot.slane %v650_v59, 1 }
  0x34   : > { %v402_v3 = vadd.f32 %v401_v54, %v389_v56  ;;  %v356_v5 = vsel %vm271_vm0, %v650_v59, 0.0  ;;  %v368_v6 = vld [vmem:[#allocation4 + $0x2] sm:$0x1]  ;;  %v646_v7 = vsel %vm264_vm4, 1.0, %v837_v0  ;;  %290 = vst [vmem:[#allocation2] sm:$0x1] %v289_v60 }
  0x35   : > { %v332_v9 = vadd.f32 %v331_v58, %v321_v61  ;;  %v280_v10 = vsel %vm271_vm0, %v277_v62, 0.0  ;;  %v283_v11 = vrot.slane %v646_v7, 1  ;;  %v357_v15 = vsel %vm271_vm0, %v354_v4, 0.0  ;;  %v405_v30 = vld [vmem:[#allocation4 + $0x3] sm:$0x1] }
  0x36   : > { %v448_v8 = vld [vmem:[#allocation3 + $0x1] sm:$0x1]  ;;  %403 = vst [vmem:[#allocation3 + $0x3] sm:$0x1] %v402_v3  ;;  %v281_v14 = vadd.f32 %v280_v10, %v279_v63  ;;  %v358_v18 = vadd.f32 %v357_v15, %v356_v5  ;;  %v285_v19 = vsel %vm271_vm0, %v646_v7, 0.0  ;;  %v652_v24 = vsel %vm373_vm1, 1.0, %v837_v0 }
  0x37   : > { %v454_v12 = vsel %vm271_vm0, %v448_v8, 0.0  ;;  %v412_v17 = vld [vmem:[#allocation2 + $0x1] sm:$0x1]  ;;  %333 = vst [vmem:[#allocation4 + $0x1] sm:$0x1] %v332_v9  ;;  %v286_v22 = vsel %vm271_vm0, %v283_v11, 0.0 }
  0x38   : > { %v414_v13 = vld [vmem:[#allocation2 + $0x3] sm:$0x1]  ;;  %455 = vadd.xlane.f32.xlu1 %v454_v12  ;;  %v418_v20 = vsel %vm271_vm0, %v412_v17, 0.0  ;;  %v292_v21 = vadd.f32 %v291_v1, %v281_v14  ;;  %v369_v25 = vadd.f32 %v368_v6, %v358_v18  ;;  %v287_v26 = vadd.f32 %v286_v22, %v285_v19 }
  0x39   : > { %v424_v16 = vsel %vm271_vm0, %v414_v13, 0.0  ;;  %419 = vadd.xlane.f32.xlu0 %v418_v20  ;;  %v391_v27 = vrot.slane %v652_v24, 1  ;;  %v393_v28 = vsel %vm271_vm0, %v652_v24, 0.0  ;;  %v413_v31 = vld [vmem:[#allocation2 + $0x2] sm:$0x1]  ;;  %vm436_vm5 = vcmask 1041409  }
  0x3a   : > { %425 = vadd.xlane.f32.xlu2 %v424_v16  ;;  %v449_v29 = vld [vmem:[#allocation3 + $0x2] sm:$0x1]  ;;  %293 = vst [vmem:[#allocation3] sm:$0x1] %v292_v21  ;;  %v295_v32 = vadd.f32 %v294_v23, %v287_v26  ;;  %v421_v2 = vsel %vm271_vm0, %v413_v31, 0.0  ;;  %vm439_vm6 = vcmask 1042434  }
  0x3b   : > { %370 = vst [vmem:[#allocation4 + $0x2] sm:$0x1] %v369_v25  ;;  %v394_v33 = vsel %vm271_vm0, %v391_v27, 0.0  ;;  %v411_v34 = vld [vmem:[#allocation2] sm:$0x1]  ;;  %v457_v36 = vsel %vm271_vm0, %v449_v29, 0.0 }
  0x3c   : > { %v395_v35 = vadd.f32 %v394_v33, %v393_v28  ;;  %v415_v0 = vsel %vm271_vm0, %v411_v34, 0.0  ;;  %296 = vst [vmem:[#allocation4] sm:$0x1] %v295_v32  ;;  %vm442_vm7 = vcmask 1043459   ;;  %vm445_vm8 = vcmask 3072  }
  0x3d   : > { %v450_v39 = vld [vmem:[#allocation3 + $0x3] sm:$0x1]  ;;  %vm478_vm9 = vcmask 11272   ;;  %vm511_vm10 = vcmask 19472  }
  0x3e   : > { %v406_v37 = vadd.f32 %v405_v30, %v395_v35  ;;  %v481_v40 = vld [vmem:[#allocation4 + $0x1] sm:$0x1]  ;;  %v460_v42 = vsel %vm271_vm0, %v450_v39, 0.0 }
  0x3f   : > { %v487_v43 = vsel %vm271_vm0, %v481_v40, 0.0 }
  0x40   : > { %416 = vadd.xlane.f32.xlu1 %v415_v0  ;;  %407 = vst [vmem:[#allocation4 + $0x3] sm:$0x1] %v406_v37 }
  0x41   : > { %422 = vadd.xlane.f32.xlu0 %v421_v2  ;;  %v447_v38 = vld [vmem:[#allocation3] sm:$0x1] }
  0x42   : > { %458 = vadd.xlane.f32.xlu2 %v457_v36  ;;  %v451_v41 = vsel %vm271_vm0, %v447_v38, 0.0  ;;  %v482_v46 = vld [vmem:[#allocation4 + $0x2] sm:$0x1] }
  0x43   : > { %v480_v44 = vld [vmem:[#allocation4] sm:$0x1]  ;;  %v490_v49 = vsel %vm271_vm0, %v482_v46, 0.0 }
  0x44   : > { %v484_v47 = vsel %vm271_vm0, %v480_v44, 0.0 }
  0x47   : > { %v483_v45 = vld [vmem:[#allocation4 + $0x3] sm:$0x1] }
  0x48   : > { %452 = vadd.xlane.f32.xlu1 %v451_v41  ;;  %v493_v48 = vsel %vm271_vm0, %v483_v45, 0.0 }
  0x49   : > { %488 = vadd.xlane.f32.xlu0 %v487_v43 }
  0x4a   : > { %461 = vadd.xlane.f32.xlu2 %v460_v42 }
  0x50   : > { %485 = vadd.xlane.f32.xlu1 %v484_v47 }
  0x51   : > { %491 = vadd.xlane.f32.xlu0 %v490_v49 }
  0x52   : > { %494 = vadd.xlane.f32.xlu2 %v493_v48 }
  0xab   : > { %v456_v50 = vpop.xlane.xlu1 %455 }
  0xac   : > { %v420_v52 = vpop.xlane.xlu0 %419  ;;  %v471_v62 = vrot.slane %v456_v50, 7 }
  0xad   : > { %v426_v51 = vpop.xlane.xlu2 %425  ;;  %v435_v53 = vrot.slane %v420_v52, 7 }
  0xae   : > { %v441_v59 = vrot.slane %v426_v51, 5 }
  0xb3   : > { %v417_v54 = vpop.xlane.xlu1 %416 }
  0xb4   : > { %v423_v56 = vpop.xlane.xlu0 %422  ;;  %v437_v57 = vsel %vm436_vm5, %v435_v53, %v417_v54 }
  0xb5   : > { %v459_v55 = vpop.xlane.xlu2 %458  ;;  %v438_v58 = vrot.slane %v423_v56, 6 }
  0xb6   : > { %v473_v63 = vrot.slane %v459_v55, 6 }
  0xb7   : > { %v440_v60 = vsel %vm439_vm6, %v438_v58, %v437_v57 }
  0xb8   : > { %v443_v61 = vsel %vm442_vm7, %v441_v59, %v440_v60 }
  0xb9   : > { %446 = vst.msk [vmem:[%s245_s5] sm:$0xf] %vm445_vm8, %v443_v61 }
  0xbb   : > { %v453_v1 = vpop.xlane.xlu1 %452 }
  0xbc   : > { %v472_v4 = vsel %vm436_vm5, %v471_v62, %v453_v1  ;;  %v489_v6 = vpop.xlane.xlu0 %488 }
  0xbd   : > { %v462_v3 = vpop.xlane.xlu2 %461  ;;  %v474_v7 = vsel %vm439_vm6, %v473_v63, %v472_v4  ;;  %v504_v9 = vrot.slane %v489_v6, 7 }
  0xbe   : > { %v475_v5 = vrot.slane %v462_v3, 5 }
  0xc0   : > { %v476_v8 = vsel %vm442_vm7, %v475_v5, %v474_v7 }
  0xc1   : > { %479 = vst.msk [vmem:[%s245_s5] sm:$0xf] %vm478_vm9, %v476_v8 }
  0xc3   : > { %v486_v10 = vpop.xlane.xlu1 %485 }
  0xc4   : > { %v492_v12 = vpop.xlane.xlu0 %491  ;;  %v505_v13 = vsel %vm436_vm5, %v504_v9, %v486_v10 }
  0xc5   : > { %v495_v11 = vpop.xlane.xlu2 %494  ;;  %v506_v15 = vrot.slane %v492_v12, 6 }
  0xc6   : > { %v508_v14 = vrot.slane %v495_v11, 5 }
  0xc7   : > { %v507_v16 = vsel %vm439_vm6, %v506_v15, %v505_v13 }
  0xc8   : > { %v509_v17 = vsel %vm442_vm7, %v508_v14, %v507_v16 }
  0xc9   : > { %512 = vst.msk [vmem:[%s245_s5] sm:$0xf] %vm511_vm10, %v509_v17 }
  0xca PF: > { %s18_s14 = sadd.s32 1, %s833_s14   ;;  %s1052_s9 = smov %s817_s10 }
  0xcb   : > { %p15_p0 = scmp.ge.s32.totalorder %s18_s14, 4   ;;  %s1053_s10 = smov %s821_s11 }
  0xcc   : > { %s1054_s11 = smov %s902_s21  ;;  %s1055_s12 = smov %s829_s13 }
  0xcd   : > { %s1056_s13 = smov %s1058_s16  ;;  %17 = sbr.rel (!%p15_p0) target bundleno = 6 (0x6), region = 101 }
  0xd2   :  { %540 = vsyncpa [#allocation6], 1 }
  0xd3   :  { %542 = vsyncpa [#allocation6 + $0x1], 1 }
  0xd4   :  { %543 = vsyncpa [#allocation8], 1 }
  0xd5   :  { %545 = vsyncpa [#allocation8 + $0x1], 1 }

</bundles_post_ra>
